<compile_context>
chip_gen: v7x
topology: tpu7x:2x2x1
jax: 0.10.0
libtpu: 0.0.40
codegen_flags: <defaults>
</compile_context>

<pallas_src>
import functools

import jax
import jax.numpy as jnp
from jax import lax
from jax.experimental import pallas as pl
from jax.experimental.pallas import tpu as pltpu

EPS = 1e-5
BF16 = jnp.bfloat16


# ------------------------------ in-kernel helpers -----------------------------
def _conv_same(x_f32, w_ref, K, L):
    """'same' 1-D conv of a (C, G*L) f32 slab holding G length-L segments.

    w_ref: (K, Cout, C) bf16 ref (tap-major).  Tap k is the input shifted by
    (k - pad) along L.  Each tap is a pltpu.roll plus an iota edge mask (which
    also stops taps crossing the G segment boundaries), cast to bf16 and
    accumulated with one MXU matmul per tap into an f32 accumulator.
    """
    C, GL = x_f32.shape
    Cout = w_ref.shape[1]
    G = GL // L
    pad = (K - 1) // 2

    # Lane position within its length-L segment (hoisted out of the tap loop;
    # built with selects so no vector remainder op is needed).
    lane = lax.broadcasted_iota(jnp.int32, (C, GL), 1)
    pos = lane
    for g in range(1, G):
        pos = jnp.where(lane >= g * L, lane - g * L, pos)

    zeros = jnp.zeros_like(x_f32)
    acc = jnp.zeros((Cout, GL), jnp.float32)
    for k in range(K):
        shift = k - pad
        if shift == 0:
            xk = x_f32
        else:
            xk = pltpu.roll(x_f32, shift=(-shift) % GL, axis=1)
            ps = pos + shift
            xk = jnp.where(jnp.logical_and(ps >= 0, ps < L), xk, zeros)
        acc = acc + jnp.dot(w_ref[k], xk.astype(BF16),
                            preferred_element_type=jnp.float32)
    return acc


def _partial_stats(y):
    """Per-channel (sum, sum_sq) over the lane axis -> (C, 2) f32.

    Taken from the f32 accumulator BEFORE the bf16 downcast.  Kept sublane-major
    on purpose: a lane-dense (2, C) layout would need an in-kernel cross-layout
    transpose that costs more than the ~8*C-byte masked store it saves; the big
    activation outputs are the lane-dense ones.
    """
    return jnp.concatenate(
        [jnp.sum(y, axis=1, keepdims=True),
         jnp.sum(y * y, axis=1, keepdims=True)], axis=1)


# ---------------------------------- kernels ------------------------------------
def _stage1_kernel(x_ref, w1_ref, ws_ref, y1_ref, s1_ref, ss_ref, *, K, L):
    """conv1(x) for one slab (+ skip-conv BN stats only, no skip writeback)."""
    x_bf = x_ref[...]                                        # (Cin, GL) bf16
    x = x_bf.astype(jnp.float32)
    y1 = _conv_same(x, w1_ref, K, L)                         # (Cout, GL) f32
    ysk = jnp.dot(ws_ref[...], x_bf,
                  preferred_element_type=jnp.float32)        # (Cout, GL) f32
    y1_ref[...] = y1.astype(y1_ref.dtype)                    # bf16 to HBM
    s1_ref[...] = _partial_stats(y1)
    ss_ref[...] = _partial_stats(ysk)


def _bn_relu_conv_kernel(y_ref, sc_ref, sh_ref, w_ref, yo_ref, s_ref, *, K, L):
    """Folded BN (scale, shift) + ReLU in f32, then the next conv (bf16 MXU)."""
    h = jnp.maximum(y_ref[...].astype(jnp.float32) * sc_ref[...] + sh_ref[...],
                    0.0)                                     # (Cout, GL) f32
    yo = _conv_same(h, w_ref, K, L)
    yo_ref[...] = yo.astype(yo_ref.dtype)
    s_ref[...] = _partial_stats(yo)


def _residual_kernel(y3_ref, x_ref, ws_ref, sc3_ref, sh3_ref, scs_ref, shs_ref,
                     o_ref):
    """Recompute 1x1 skip conv from x, fold both BNs, residual add, ReLU (f32)."""
    skip = jnp.dot(ws_ref[...], x_ref[...],
                   preferred_element_type=jnp.float32)       # (Cout, GL) f32
    main = y3_ref[...].astype(jnp.float32) * sc3_ref[...] + sh3_ref[...]
    skip = skip * scs_ref[...] + shs_ref[...]
    o_ref[...] = jnp.maximum(main + skip, 0.0).astype(o_ref.dtype)


# ----------------------------------- wrapper -----------------------------------
def _finalize_bn(partial, n, gamma, beta):
    """partial: (NG, C, 2) per-step (sum, sum_sq).  Returns folded (scale, shift),
    each (C, 1), so y*scale + shift == (y - mean)*rsqrt(var+eps)*gamma + beta
    with biased (train-mode) variance over (B, L)."""
    s = jnp.sum(partial, axis=0)                      # (C, 2)
    mean = s[:, 0] / n
    var = jnp.maximum(s[:, 1] / n - mean * mean, 0.0)
    scale = gamma * lax.rsqrt(var + EPS)
    shift = beta - mean * scale
    return scale.reshape(-1, 1), shift.reshape(-1, 1)


def _vmem_limit_bytes():
    """~3/4 of physical VMEM: ~96 MiB on v5e/v6e (128 MiB), ~48 MiB on v7x (64 MiB)."""
    try:
        cap = getattr(pltpu.get_tpu_info(), "vmem_capacity_bytes", None)
    except Exception:
        cap = None
    return int(cap * 3 // 4) if cap else 48 * 1024 * 1024


def _pick_group(B, L, target_lanes=512):
    """Largest divisor G of B with G*L <= target_lanes (or G=1 if L is already big)."""
    g = 1
    for cand in range(1, B + 1):
        if B % cand == 0 and cand * L <= max(target_lanes, L):
            g = cand
    return g


@jax.jit
def conv_block_forward(x_ncl, params):
    """x_ncl: (B, Cin, L) float32 -> (B, Cout, L) float32 (train-mode BatchNorm)."""
    B, Cin, L = x_ncl.shape
    w1, w2, w3, wskip = params["w1"], params["w2"], params["w3"], params["wskip"]
    Cout, _, K = w1.shape
    if K % 2 == 0:
        raise NotImplementedError(
            "even kernel_size: PyTorch 'same' pads asymmetrically (unsupported)")
    gamma, beta = params["gamma"], params["beta"]
    n = B * L

    # Tap-major bf16 weight stacks: tap k is w_ref[k] = (Cout, C) inside the kernel.
    w1t = jnp.transpose(w1, (2, 0, 1)).astype(BF16)          # (K, Cout, Cin)
    w2t = jnp.transpose(w2, (2, 0, 1)).astype(BF16)          # (K, Cout, Cout)
    w3t = jnp.transpose(w3, (2, 0, 1)).astype(BF16)          # (K, Cout, Cout)
    wsm = wskip[:, :, 0].astype(BF16)                        # (Cout, Cin)
    # Conv biases are intentionally unused: train-mode BN subtracts the batch
    # mean right after every conv, which cancels a per-channel bias exactly
    # (the pure-JAX reference keeps them and still matches).

    # Lay G batch elements side-by-side on the lane axis: (NG, C, G*L) slabs.
    G = _pick_group(B, L)
    NG, GL = B // G, G * L
    xg = (x_ncl.reshape(NG, G, Cin, L).transpose(0, 2, 1, 3)
          .reshape(NG, Cin, GL).astype(BF16))

    cparams = pltpu.CompilerParams(
        dimension_semantics=("parallel",),
        vmem_limit_bytes=_vmem_limit_bytes())

    act_sd = jax.ShapeDtypeStruct((NG, Cout, GL), BF16)
    st_sd = jax.ShapeDtypeStruct((NG, Cout, 2), jnp.float32)
    act_spec = pl.BlockSpec((None, Cout, GL), lambda b: (b, 0, 0))
    x_spec = pl.BlockSpec((None, Cin, GL), lambda b: (b, 0, 0))
    st_spec = pl.BlockSpec((None, Cout, 2), lambda b: (b, 0, 0))
    vec_spec = pl.BlockSpec((Cout, 1), lambda b: (0, 0))
    w1_spec = pl.BlockSpec((K, Cout, Cin), lambda b: (0, 0, 0))
    w_spec = pl.BlockSpec((K, Cout, Cout), lambda b: (0, 0, 0))
    ws_spec = pl.BlockSpec((Cout, Cin), lambda b: (0, 0))

    act_bytes = Cout * GL * 2          # bf16 inter-pass activations
    x_bytes = Cin * GL * 2
    conv_flops = 2 * GL * K * Cout * Cout

    # ---- pass 1: conv1(x) (+ skip-conv stats only), per-step partial BN stats --
    y1, s1, ssk = pl.pallas_call(
        functools.partial(_stage1_kernel, K=K, L=L),
        grid=(NG,),
        in_specs=[x_spec, w1_spec, ws_spec],
        out_specs=[act_spec, st_spec, st_spec],
        out_shape=(act_sd, st_sd, st_sd),
        compiler_params=cparams,
        cost_estimate=pl.CostEstimate(
            flops=NG * 2 * GL * (K + 1) * Cin * Cout, transcendentals=0,
            bytes_accessed=NG * (x_bytes + act_bytes)),
    )(xg, w1t, wsm)
    sc1, sh1 = _finalize_bn(s1, n, gamma, beta)

    # ---- passes 2 & 3: folded BN + ReLU -> next conv ---------------------------
    def bn_relu_conv(y, sc, sh, wt):
        return pl.pallas_call(
            functools.partial(_bn_relu_conv_kernel, K=K, L=L),
            grid=(NG,),
            in_specs=[act_spec, vec_spec, vec_spec, w_spec],
            out_specs=[act_spec, st_spec],
            out_shape=(act_sd, st_sd),
            compiler_params=cparams,
            cost_estimate=pl.CostEstimate(flops=NG * conv_flops, transcendentals=0,
                                          bytes_accessed=NG * 2 * act_bytes),
        )(y, sc, sh, wt)

    y2, s2 = bn_relu_conv(y1, sc1, sh1, w2t)
    sc2, sh2 = _finalize_bn(s2, n, gamma, beta)
    y3, s3 = bn_relu_conv(y2, sc2, sh2, w3t)
    sc3, sh3 = _finalize_bn(s3, n, gamma, beta)
    scs, shs = _finalize_bn(ssk, n, gamma, beta)

    # ---- pass 4: recomputed 1x1 skip conv + both folded BNs + add + ReLU -------
    outg = pl.pallas_call(
        _residual_kernel,
        grid=(NG,),
        in_specs=[act_spec, x_spec, ws_spec,
                  vec_spec, vec_spec, vec_spec, vec_spec],
        out_specs=pl.BlockSpec((None, Cout, GL), lambda b: (b, 0, 0)),
        out_shape=jax.ShapeDtypeStruct((NG, Cout, GL), jnp.float32),
        compiler_params=cparams,
        cost_estimate=pl.CostEstimate(
            flops=NG * (2 * GL * Cin * Cout + 6 * Cout * GL), transcendentals=0,
            bytes_accessed=NG * (act_bytes + x_bytes + Cout * GL * 4)),
    )(y3, xg, wsm, sc3, sh3, scs, shs)

    # Ungroup back to (B, Cout, L).
    return (outg.reshape(NG, Cout, G, L).transpose(0, 2, 1, 3)
            .reshape(B, Cout, L))


# ----------------------------------- params ------------------------------------
def init_params(key, d_input, d_out, kernel_size):
    ks = jax.random.split(key, 8)

    def conv_init(kw, kb, cin, cout, ksz):
        bound = 1.0 / jnp.sqrt(cin * ksz)
        w = jax.random.uniform(kw, (cout, cin, ksz), jnp.float32, -bound, bound)
        b = jax.random.uniform(kb, (cout,), jnp.float32, -bound, bound)
        return w, b

    w1, b1 = conv_init(ks[0], ks[1], d_input, d_out, kernel_size)
    w2, b2 = conv_init(ks[2], ks[3], d_out, d_out, kernel_size)
    w3, b3 = conv_init(ks[4], ks[5], d_out, d_out, kernel_size)
    wskip, bskip = conv_init(ks[6], ks[7], d_input, d_out, 1)
    return dict(w1=w1, b1=b1, w2=w2, b2=b2, w3=w3, b3=b3,
                wskip=wskip, bskip=bskip,
                gamma=jnp.ones((d_out,), jnp.float32),
                beta=jnp.zeros((d_out,), jnp.float32))


# ------------------------------ pure-JAX reference ------------------------------
def ref_forward(x_ncl, params):
    def conv(x, w_oik, b):
        y = lax.conv_general_dilated(x, w_oik, (1,), "SAME",
                                     dimension_numbers=("NCH", "OIH", "NCH"))
        return y + b.reshape(1, -1, 1)

    def bn(t):
        mean = jnp.mean(t, axis=(0, 2), keepdims=True)
        var = jnp.mean((t - mean) ** 2, axis=(0, 2), keepdims=True)
        g = params["gamma"].reshape(1, -1, 1)
        b = params["beta"].reshape(1, -1, 1)
        return (t - mean) / jnp.sqrt(var + EPS) * g + b

    relu = lambda t: jnp.maximum(t, 0.0)
    skip = bn(conv(x_ncl, params["wskip"], params["bskip"]))
    h = relu(bn(conv(x_ncl, params["w1"], params["b1"])))
    h = relu(bn(conv(h, params["w2"], params["b2"])))
    h = bn(conv(h, params["w3"], params["b3"]))
    return relu(h + skip)


if __name__ == "__main__":
    B, d_input, d_out, L, kernel_size = 2, 4, 8, 16, 3

    key = jax.random.PRNGKey(0)
    kx, kp = jax.random.split(key)
    x = jax.random.normal(kx, (B, d_input, L), jnp.float32)
    params = init_params(kp, d_input, d_out, kernel_size)

    out = jax.block_until_ready(conv_block_forward(x, params))
    ref = jax.block_until_ready(ref_forward(x, params))

    assert out.shape == (B, d_out, L), out.shape
    err = float(jnp.max(jnp.abs(out - ref)))
    # bf16 weights/activations on the MXU/HBM path widen drift vs the f32 reference.
    assert err < 1e-1, err
    print("KERNEL_OK")
</pallas_src>

<mosaic_0001>
module attributes {stable_mosaic.version = 11 : i64} {
  func.func @_bn_relu_conv_kernel(%arg0: i32, %arg1: memref<1x8x32xbf16, #tpu.memory_space<vmem>>, %arg2: memref<8x1xf32, #tpu.memory_space<vmem>>, %arg3: memref<8x1xf32, #tpu.memory_space<vmem>>, %arg4: memref<3x8x8xbf16, #tpu.memory_space<vmem>>, %arg5: memref<1x8x32xbf16, #tpu.memory_space<vmem>>, %arg6: memref<1x8x2xf32, #tpu.memory_space<vmem>>) attributes {dimension_semantics = [#tpu.dimension_semantics<parallel>], iteration_bounds = array<i64: 1>, scalar_prefetch = 0 : i64, scratch_operands = 0 : i64, tpu.core_type = #tpu.core_type<tc>, window_params = [{transform_indices = @transform_0, window_bounds = array<i64: 1, 8, 32>}, {pipeline_mode = #tpu.pipeline_mode<synchronous>, transform_indices = @transform_1, window_bounds = array<i64: 8, 1>}, {pipeline_mode = #tpu.pipeline_mode<synchronous>, transform_indices = @transform_2, window_bounds = array<i64: 8, 1>}, {pipeline_mode = #tpu.pipeline_mode<synchronous>, transform_indices = @transform_3, window_bounds = array<i64: 3, 8, 8>}, {transform_indices = @transform_4, window_bounds = array<i64: 1, 8, 32>}, {transform_indices = @transform_5, window_bounds = array<i64: 1, 8, 2>}]} {
    %c0 = arith.constant 0 : index
    %c0_0 = arith.constant 0 : index
    %c0_1 = arith.constant 0 : index
    %0 = vector.load %arg1[%c0, %c0_0, %c0_1] : memref<1x8x32xbf16, #tpu.memory_space<vmem>>, vector<1x8x32xbf16>
    %1 = vector.shape_cast %0 : vector<1x8x32xbf16> to vector<8x32xbf16>
    %2 = arith.extf %1 : vector<8x32xbf16> to vector<8x32xf32>
    %c0_2 = arith.constant 0 : index
    %c0_3 = arith.constant 0 : index
    %3 = vector.load %arg2[%c0_2, %c0_3] : memref<8x1xf32, #tpu.memory_space<vmem>>, vector<8x1xf32>
    %4 = vector.broadcast %3 : vector<8x1xf32> to vector<8x32xf32>
    %5 = arith.mulf %2, %4 : vector<8x32xf32>
    %c0_4 = arith.constant 0 : index
    %c0_5 = arith.constant 0 : index
    %6 = vector.load %arg3[%c0_4, %c0_5] : memref<8x1xf32, #tpu.memory_space<vmem>>, vector<8x1xf32>
    %7 = vector.broadcast %6 : vector<8x1xf32> to vector<8x32xf32>
    %8 = arith.addf %5, %7 : vector<8x32xf32>
    %cst = arith.constant 0.000000e+00 : f32
    %9 = vector.broadcast %cst : f32 to vector<8x32xf32>
    %10 = arith.maximumf %8, %9 : vector<8x32xf32>
    %11 = tpu.iota {dimensions = array<i32: 1>} : vector<8x32xi32>
    %c16_i32 = arith.constant 16 : i32
    %12 = vector.broadcast %c16_i32 : i32 to vector<8x32xi32>
    %13 = arith.cmpi sge, %11, %12 : vector<8x32xi32>
    %c16_i32_6 = arith.constant 16 : i32
    %14 = vector.broadcast %c16_i32_6 : i32 to vector<8x32xi32>
    %15 = arith.subi %11, %14 : vector<8x32xi32>
    %16 = arith.select %13, %15, %11 : vector<8x32xi1>, vector<8x32xi32>
    %cst_7 = arith.constant 0.000000e+00 : f32
    %17 = vector.broadcast %cst_7 : f32 to vector<8x32xf32>
    %cst_8 = arith.constant 0.000000e+00 : f32
    %18 = vector.broadcast %cst_8 : f32 to vector<8x32xf32>
    %c1_i32 = arith.constant 1 : i32
    %19 = tpu.dynamic_rotate %10 by %c1_i32 dim 1 : vector<8x32xf32>, i32 -> vector<8x32xf32>
    %c-1_i32 = arith.constant -1 : i32
    %20 = vector.broadcast %c-1_i32 : i32 to vector<8x32xi32>
    %21 = arith.addi %16, %20 : vector<8x32xi32>
    %c0_i32 = arith.constant 0 : i32
    %22 = vector.broadcast %c0_i32 : i32 to vector<8x32xi32>
    %23 = arith.cmpi sge, %21, %22 : vector<8x32xi32>
    %c16_i32_9 = arith.constant 16 : i32
    %24 = vector.broadcast %c16_i32_9 : i32 to vector<8x32xi32>
    %25 = arith.cmpi slt, %21, %24 : vector<8x32xi32>
    %26 = arith.andi %23, %25 : vector<8x32xi1>
    %27 = arith.select %26, %19, %17 : vector<8x32xi1>, vector<8x32xf32>
    %c0_10 = arith.constant 0 : index
    %c0_11 = arith.constant 0 : index
    %c0_12 = arith.constant 0 : index
    %28 = vector.load %arg4[%c0_10, %c0_11, %c0_12] : memref<3x8x8xbf16, #tpu.memory_space<vmem>>, vector<1x8x8xbf16>
    %29 = vector.shape_cast %28 : vector<1x8x8xbf16> to vector<8x8xbf16>
    %30 = arith.truncf %27 : vector<8x32xf32> to vector<8x32xbf16>
    %cst_13 = arith.constant dense<0.000000e+00> : vector<8x32xf32>
    %31 = tpu.matmul %29, %30, %cst_13 {dimension_numbers = #tpu.dot_dimension_numbers<[1], [0], [0], [1], [0, 0, 1, 1], [], []>} : vector<8x8xbf16>, vector<8x32xbf16>, vector<8x32xf32> -> vector<8x32xf32>
    %32 = arith.addf %18, %31 : vector<8x32xf32>
    %c1 = arith.constant 1 : index
    %c0_14 = arith.constant 0 : index
    %c0_15 = arith.constant 0 : index
    %33 = vector.load %arg4[%c1, %c0_14, %c0_15] : memref<3x8x8xbf16, #tpu.memory_space<vmem>>, vector<1x8x8xbf16>
    %34 = vector.shape_cast %33 : vector<1x8x8xbf16> to vector<8x8xbf16>
    %35 = arith.truncf %10 : vector<8x32xf32> to vector<8x32xbf16>
    %cst_16 = arith.constant dense<0.000000e+00> : vector<8x32xf32>
    %36 = tpu.matmul %34, %35, %cst_16 {dimension_numbers = #tpu.dot_dimension_numbers<[1], [0], [0], [1], [0, 0, 1, 1], [], []>} : vector<8x8xbf16>, vector<8x32xbf16>, vector<8x32xf32> -> vector<8x32xf32>
    %37 = arith.addf %32, %36 : vector<8x32xf32>
    %c31_i32 = arith.constant 31 : i32
    %38 = tpu.dynamic_rotate %10 by %c31_i32 dim 1 : vector<8x32xf32>, i32 -> vector<8x32xf32>
    %c1_i32_17 = arith.constant 1 : i32
    %39 = vector.broadcast %c1_i32_17 : i32 to vector<8x32xi32>
    %40 = arith.addi %16, %39 : vector<8x32xi32>
    %c0_i32_18 = arith.constant 0 : i32
    %41 = vector.broadcast %c0_i32_18 : i32 to vector<8x32xi32>
    %42 = arith.cmpi sge, %40, %41 : vector<8x32xi32>
    %c16_i32_19 = arith.constant 16 : i32
    %43 = vector.broadcast %c16_i32_19 : i32 to vector<8x32xi32>
    %44 = arith.cmpi slt, %40, %43 : vector<8x32xi32>
    %45 = arith.andi %42, %44 : vector<8x32xi1>
    %46 = arith.select %45, %38, %17 : vector<8x32xi1>, vector<8x32xf32>
    %c2 = arith.constant 2 : index
    %c0_20 = arith.constant 0 : index
    %c0_21 = arith.constant 0 : index
    %47 = vector.load %arg4[%c2, %c0_20, %c0_21] : memref<3x8x8xbf16, #tpu.memory_space<vmem>>, vector<1x8x8xbf16>
    %48 = vector.shape_cast %47 : vector<1x8x8xbf16> to vector<8x8xbf16>
    %49 = arith.truncf %46 : vector<8x32xf32> to vector<8x32xbf16>
    %cst_22 = arith.constant dense<0.000000e+00> : vector<8x32xf32>
    %50 = tpu.matmul %48, %49, %cst_22 {dimension_numbers = #tpu.dot_dimension_numbers<[1], [0], [0], [1], [0, 0, 1, 1], [], []>} : vector<8x8xbf16>, vector<8x32xbf16>, vector<8x32xf32> -> vector<8x32xf32>
    %51 = arith.addf %37, %50 : vector<8x32xf32>
    %52 = arith.truncf %51 : vector<8x32xf32> to vector<8x32xbf16>
    %c0_23 = arith.constant 0 : index
    %c0_24 = arith.constant 0 : index
    %c0_25 = arith.constant 0 : index
    %53 = vector.load %arg5[%c0_23, %c0_24, %c0_25] : memref<1x8x32xbf16, #tpu.memory_space<vmem>>, vector<1x8x32xbf16>
    %54 = vector.shape_cast %53 : vector<1x8x32xbf16> to vector<8x32xbf16>
    %55 = vector.shape_cast %52 : vector<8x32xbf16> to vector<1x8x32xbf16>
    tpu.vector_store %arg5[%c0_23, %c0_24, %c0_25], %55 {strides = array<i32>} : memref<1x8x32xbf16, #tpu.memory_space<vmem>>, vector<1x8x32xbf16>,
    %cst_26 = arith.constant dense<0.000000e+00> : vector<8xf32>
    %56 = vector.multi_reduction <add>, %51, %cst_26 [1] : vector<8x32xf32> to vector<8xf32>
    %57 = vector.shape_cast %56 : vector<8xf32> to vector<8x1xf32>
    %58 = arith.mulf %51, %51 : vector<8x32xf32>
    %cst_27 = arith.constant dense<0.000000e+00> : vector<8xf32>
    %59 = vector.multi_reduction <add>, %58, %cst_27 [1] : vector<8x32xf32> to vector<8xf32>
    %60 = vector.shape_cast %59 : vector<8xf32> to vector<8x1xf32>
    %61 = tpu.concatenate %57, %60 in 1 : vector<8x1xf32>, vector<8x1xf32> -> vector<8x2xf32>
    %c0_28 = arith.constant 0 : index
    %c0_29 = arith.constant 0 : index
    %c0_30 = arith.constant 0 : index
    %62 = vector.load %arg6[%c0_28, %c0_29, %c0_30] : memref<1x8x2xf32, #tpu.memory_space<vmem>>, vector<1x8x2xf32>
    %63 = vector.shape_cast %62 : vector<1x8x2xf32> to vector<8x2xf32>
    %64 = vector.shape_cast %61 : vector<8x2xf32> to vector<1x8x2xf32>
    tpu.vector_store %arg6[%c0_28, %c0_29, %c0_30], %64 {strides = array<i32>} : memref<1x8x2xf32, #tpu.memory_space<vmem>>, vector<1x8x2xf32>,
    return
  }
  func.func @transform_0(%arg0: i32) -> (i32, i32, i32) {
    %c0_i32 = arith.constant 0 : i32
    %c0_i32_0 = arith.constant 0 : i32
    %c0_i32_1 = arith.constant 0 : i32
    return %arg0, %c0_i32, %c0_i32_0 : i32, i32, i32
  }
  func.func @transform_1(%arg0: i32) -> (i32, i32) {
    %c0_i32 = arith.constant 0 : i32
    %c0_i32_0 = arith.constant 0 : i32
    %c0_i32_1 = arith.constant 0 : i32
    return %c0_i32, %c0_i32_0 : i32, i32
  }
  func.func @transform_2(%arg0: i32) -> (i32, i32) {
    %c0_i32 = arith.constant 0 : i32
    %c0_i32_0 = arith.constant 0 : i32
    %c0_i32_1 = arith.constant 0 : i32
    return %c0_i32, %c0_i32_0 : i32, i32
  }
  func.func @transform_3(%arg0: i32) -> (i32, i32, i32) {
    %c0_i32 = arith.constant 0 : i32
    %c0_i32_0 = arith.constant 0 : i32
    %c0_i32_1 = arith.constant 0 : i32
    %c0_i32_2 = arith.constant 0 : i32
    return %c0_i32, %c0_i32_0, %c0_i32_1 : i32, i32, i32
  }
  func.func @transform_4(%arg0: i32) -> (i32, i32, i32) {
    %c0_i32 = arith.constant 0 : i32
    %c0_i32_0 = arith.constant 0 : i32
    %c0_i32_1 = arith.constant 0 : i32
    return %arg0, %c0_i32, %c0_i32_0 : i32, i32, i32
  }
  func.func @transform_5(%arg0: i32) -> (i32, i32, i32) {
    %c0_i32 = arith.constant 0 : i32
    %c0_i32_0 = arith.constant 0 : i32
    %c0_i32_1 = arith.constant 0 : i32
    return %arg0, %c0_i32, %c0_i32_0 : i32, i32, i32
  }
}

module attributes {stable_mosaic.version = 11 : i64} {
  func.func @_stage1_kernel(%arg0: i32, %arg1: memref<1x4x32xbf16, #tpu.memory_space<vmem>>, %arg2: memref<3x8x4xbf16, #tpu.memory_space<vmem>>, %arg3: memref<8x4xbf16, #tpu.memory_space<vmem>>, %arg4: memref<1x8x32xbf16, #tpu.memory_space<vmem>>, %arg5: memref<1x8x2xf32, #tpu.memory_space<vmem>>, %arg6: memref<1x8x2xf32, #tpu.memory_space<vmem>>) attributes {dimension_semantics = [#tpu.dimension_semantics<parallel>], iteration_bounds = array<i64: 1>, scalar_prefetch = 0 : i64, scratch_operands = 0 : i64, tpu.core_type = #tpu.core_type<tc>, window_params = [{transform_indices = @transform_0, window_bounds = array<i64: 1, 4, 32>}, {pipeline_mode = #tpu.pipeline_mode<synchronous>, transform_indices = @transform_1, window_bounds = array<i64: 3, 8, 4>}, {pipeline_mode = #tpu.pipeline_mode<synchronous>, transform_indices = @transform_2, window_bounds = array<i64: 8, 4>}, {transform_indices = @transform_3, window_bounds = array<i64: 1, 8, 32>}, {transform_indices = @transform_4, window_bounds = array<i64: 1, 8, 2>}, {transform_indices = @transform_5, window_bounds = array<i64: 1, 8, 2>}]} {
    %c0 = arith.constant 0 : index
    %c0_0 = arith.constant 0 : index
    %c0_1 = arith.constant 0 : index
    %0 = vector.load %arg1[%c0, %c0_0, %c0_1] : memref<1x4x32xbf16, #tpu.memory_space<vmem>>, vector<1x4x32xbf16>
    %1 = vector.shape_cast %0 : vector<1x4x32xbf16> to vector<4x32xbf16>
    %2 = arith.extf %1 : vector<4x32xbf16> to vector<4x32xf32>
    %3 = tpu.iota {dimensions = array<i32: 1>} : vector<4x32xi32>
    %c16_i32 = arith.constant 16 : i32
    %4 = vector.broadcast %c16_i32 : i32 to vector<4x32xi32>
    %5 = arith.cmpi sge, %3, %4 : vector<4x32xi32>
    %c16_i32_2 = arith.constant 16 : i32
    %6 = vector.broadcast %c16_i32_2 : i32 to vector<4x32xi32>
    %7 = arith.subi %3, %6 : vector<4x32xi32>
    %8 = arith.select %5, %7, %3 : vector<4x32xi1>, vector<4x32xi32>
    %cst = arith.constant 0.000000e+00 : f32
    %9 = vector.broadcast %cst : f32 to vector<4x32xf32>
    %cst_3 = arith.constant 0.000000e+00 : f32
    %10 = vector.broadcast %cst_3 : f32 to vector<8x32xf32>
    %c1_i32 = arith.constant 1 : i32
    %11 = tpu.dynamic_rotate %2 by %c1_i32 dim 1 : vector<4x32xf32>, i32 -> vector<4x32xf32>
    %c-1_i32 = arith.constant -1 : i32
    %12 = vector.broadcast %c-1_i32 : i32 to vector<4x32xi32>
    %13 = arith.addi %8, %12 : vector<4x32xi32>
    %c0_i32 = arith.constant 0 : i32
    %14 = vector.broadcast %c0_i32 : i32 to vector<4x32xi32>
    %15 = arith.cmpi sge, %13, %14 : vector<4x32xi32>
    %c16_i32_4 = arith.constant 16 : i32
    %16 = vector.broadcast %c16_i32_4 : i32 to vector<4x32xi32>
    %17 = arith.cmpi slt, %13, %16 : vector<4x32xi32>
    %18 = arith.andi %15, %17 : vector<4x32xi1>
    %19 = arith.select %18, %11, %9 : vector<4x32xi1>, vector<4x32xf32>
    %c0_5 = arith.constant 0 : index
    %c0_6 = arith.constant 0 : index
    %c0_7 = arith.constant 0 : index
    %20 = vector.load %arg2[%c0_5, %c0_6, %c0_7] : memref<3x8x4xbf16, #tpu.memory_space<vmem>>, vector<1x8x4xbf16>
    %21 = vector.shape_cast %20 : vector<1x8x4xbf16> to vector<8x4xbf16>
    %22 = arith.truncf %19 : vector<4x32xf32> to vector<4x32xbf16>
    %cst_8 = arith.constant dense<0.000000e+00> : vector<8x32xf32>
    %23 = tpu.matmul %21, %22, %cst_8 {dimension_numbers = #tpu.dot_dimension_numbers<[1], [0], [0], [1], [0, 0, 1, 1], [], []>} : vector<8x4xbf16>, vector<4x32xbf16>, vector<8x32xf32> -> vector<8x32xf32>
    %24 = arith.addf %10, %23 : vector<8x32xf32>
    %c1 = arith.constant 1 : index
    %c0_9 = arith.constant 0 : index
    %c0_10 = arith.constant 0 : index
    %25 = vector.load %arg2[%c1, %c0_9, %c0_10] : memref<3x8x4xbf16, #tpu.memory_space<vmem>>, vector<1x8x4xbf16>
    %26 = vector.shape_cast %25 : vector<1x8x4xbf16> to vector<8x4xbf16>
    %27 = arith.truncf %2 : vector<4x32xf32> to vector<4x32xbf16>
    %cst_11 = arith.constant dense<0.000000e+00> : vector<8x32xf32>
    %28 = tpu.matmul %26, %27, %cst_11 {dimension_numbers = #tpu.dot_dimension_numbers<[1], [0], [0], [1], [0, 0, 1, 1], [], []>} : vector<8x4xbf16>, vector<4x32xbf16>, vector<8x32xf32> -> vector<8x32xf32>
    %29 = arith.addf %24, %28 : vector<8x32xf32>
    %c31_i32 = arith.constant 31 : i32
    %30 = tpu.dynamic_rotate %2 by %c31_i32 dim 1 : vector<4x32xf32>, i32 -> vector<4x32xf32>
    %c1_i32_12 = arith.constant 1 : i32
    %31 = vector.broadcast %c1_i32_12 : i32 to vector<4x32xi32>
    %32 = arith.addi %8, %31 : vector<4x32xi32>
    %c0_i32_13 = arith.constant 0 : i32
    %33 = vector.broadcast %c0_i32_13 : i32 to vector<4x32xi32>
    %34 = arith.cmpi sge, %32, %33 : vector<4x32xi32>
    %c16_i32_14 = arith.constant 16 : i32
    %35 = vector.broadcast %c16_i32_14 : i32 to vector<4x32xi32>
    %36 = arith.cmpi slt, %32, %35 : vector<4x32xi32>
    %37 = arith.andi %34, %36 : vector<4x32xi1>
    %38 = arith.select %37, %30, %9 : vector<4x32xi1>, vector<4x32xf32>
    %c2 = arith.constant 2 : index
    %c0_15 = arith.constant 0 : index
    %c0_16 = arith.constant 0 : index
    %39 = vector.load %arg2[%c2, %c0_15, %c0_16] : memref<3x8x4xbf16, #tpu.memory_space<vmem>>, vector<1x8x4xbf16>
    %40 = vector.shape_cast %39 : vector<1x8x4xbf16> to vector<8x4xbf16>
    %41 = arith.truncf %38 : vector<4x32xf32> to vector<4x32xbf16>
    %cst_17 = arith.constant dense<0.000000e+00> : vector<8x32xf32>
    %42 = tpu.matmul %40, %41, %cst_17 {dimension_numbers = #tpu.dot_dimension_numbers<[1], [0], [0], [1], [0, 0, 1, 1], [], []>} : vector<8x4xbf16>, vector<4x32xbf16>, vector<8x32xf32> -> vector<8x32xf32>
    %43 = arith.addf %29, %42 : vector<8x32xf32>
    %c0_18 = arith.constant 0 : index
    %c0_19 = arith.constant 0 : index
    %44 = vector.load %arg3[%c0_18, %c0_19] : memref<8x4xbf16, #tpu.memory_space<vmem>>, vector<8x4xbf16>
    %cst_20 = arith.constant dense<0.000000e+00> : vector<8x32xf32>
    %45 = tpu.matmul %44, %1, %cst_20 {dimension_numbers = #tpu.dot_dimension_numbers<[1], [0], [0], [1], [0, 0, 1, 1], [], []>} : vector<8x4xbf16>, vector<4x32xbf16>, vector<8x32xf32> -> vector<8x32xf32>
    %46 = arith.truncf %43 : vector<8x32xf32> to vector<8x32xbf16>
    %c0_21 = arith.constant 0 : index
    %c0_22 = arith.constant 0 : index
    %c0_23 = arith.constant 0 : index
    %47 = vector.load %arg4[%c0_21, %c0_22, %c0_23] : memref<1x8x32xbf16, #tpu.memory_space<vmem>>, vector<1x8x32xbf16>
    %48 = vector.shape_cast %47 : vector<1x8x32xbf16> to vector<8x32xbf16>
    %49 = vector.shape_cast %46 : vector<8x32xbf16> to vector<1x8x32xbf16>
    tpu.vector_store %arg4[%c0_21, %c0_22, %c0_23], %49 {strides = array<i32>} : memref<1x8x32xbf16, #tpu.memory_space<vmem>>, vector<1x8x32xbf16>,
    %cst_24 = arith.constant dense<0.000000e+00> : vector<8xf32>
    %50 = vector.multi_reduction <add>, %43, %cst_24 [1] : vector<8x32xf32> to vector<8xf32>
    %51 = vector.shape_cast %50 : vector<8xf32> to vector<8x1xf32>
    %52 = arith.mulf %43, %43 : vector<8x32xf32>
    %cst_25 = arith.constant dense<0.000000e+00> : vector<8xf32>
    %53 = vector.multi_reduction <add>, %52, %cst_25 [1] : vector<8x32xf32> to vector<8xf32>
    %54 = vector.shape_cast %53 : vector<8xf32> to vector<8x1xf32>
    %55 = tpu.concatenate %51, %54 in 1 : vector<8x1xf32>, vector<8x1xf32> -> vector<8x2xf32>
    %c0_26 = arith.constant 0 : index
    %c0_27 = arith.constant 0 : index
    %c0_28 = arith.constant 0 : index
    %56 = vector.load %arg5[%c0_26, %c0_27, %c0_28] : memref<1x8x2xf32, #tpu.memory_space<vmem>>, vector<1x8x2xf32>
    %57 = vector.shape_cast %56 : vector<1x8x2xf32> to vector<8x2xf32>
    %58 = vector.shape_cast %55 : vector<8x2xf32> to vector<1x8x2xf32>
    tpu.vector_store %arg5[%c0_26, %c0_27, %c0_28], %58 {strides = array<i32>} : memref<1x8x2xf32, #tpu.memory_space<vmem>>, vector<1x8x2xf32>,
    %cst_29 = arith.constant dense<0.000000e+00> : vector<8xf32>
    %59 = vector.multi_reduction <add>, %45, %cst_29 [1] : vector<8x32xf32> to vector<8xf32>
    %60 = vector.shape_cast %59 : vector<8xf32> to vector<8x1xf32>
    %61 = arith.mulf %45, %45 : vector<8x32xf32>
    %cst_30 = arith.constant dense<0.000000e+00> : vector<8xf32>
    %62 = vector.multi_reduction <add>, %61, %cst_30 [1] : vector<8x32xf32> to vector<8xf32>
    %63 = vector.shape_cast %62 : vector<8xf32> to vector<8x1xf32>
    %64 = tpu.concatenate %60, %63 in 1 : vector<8x1xf32>, vector<8x1xf32> -> vector<8x2xf32>
    %c0_31 = arith.constant 0 : index
    %c0_32 = arith.constant 0 : index
    %c0_33 = arith.constant 0 : index
    %65 = vector.load %arg6[%c0_31, %c0_32, %c0_33] : memref<1x8x2xf32, #tpu.memory_space<vmem>>, vector<1x8x2xf32>
    %66 = vector.shape_cast %65 : vector<1x8x2xf32> to vector<8x2xf32>
    %67 = vector.shape_cast %64 : vector<8x2xf32> to vector<1x8x2xf32>
    tpu.vector_store %arg6[%c0_31, %c0_32, %c0_33], %67 {strides = array<i32>} : memref<1x8x2xf32, #tpu.memory_space<vmem>>, vector<1x8x2xf32>,
    return
  }
  func.func @transform_0(%arg0: i32) -> (i32, i32, i32) {
    %c0_i32 = arith.constant 0 : i32
    %c0_i32_0 = arith.constant 0 : i32
    %c0_i32_1 = arith.constant 0 : i32
    return %arg0, %c0_i32, %c0_i32_0 : i32, i32, i32
  }
  func.func @transform_1(%arg0: i32) -> (i32, i32, i32) {
    %c0_i32 = arith.constant 0 : i32
    %c0_i32_0 = arith.constant 0 : i32
    %c0_i32_1 = arith.constant 0 : i32
    %c0_i32_2 = arith.constant 0 : i32
    return %c0_i32, %c0_i32_0, %c0_i32_1 : i32, i32, i32
  }
  func.func @transform_2(%arg0: i32) -> (i32, i32) {
    %c0_i32 = arith.constant 0 : i32
    %c0_i32_0 = arith.constant 0 : i32
    %c0_i32_1 = arith.constant 0 : i32
    return %c0_i32, %c0_i32_0 : i32, i32
  }
  func.func @transform_3(%arg0: i32) -> (i32, i32, i32) {
    %c0_i32 = arith.constant 0 : i32
    %c0_i32_0 = arith.constant 0 : i32
    %c0_i32_1 = arith.constant 0 : i32
    return %arg0, %c0_i32, %c0_i32_0 : i32, i32, i32
  }
  func.func @transform_4(%arg0: i32) -> (i32, i32, i32) {
    %c0_i32 = arith.constant 0 : i32
    %c0_i32_0 = arith.constant 0 : i32
    %c0_i32_1 = arith.constant 0 : i32
    return %arg0, %c0_i32, %c0_i32_0 : i32, i32, i32
  }
  func.func @transform_5(%arg0: i32) -> (i32, i32, i32) {
    %c0_i32 = arith.constant 0 : i32
    %c0_i32_0 = arith.constant 0 : i32
    %c0_i32_1 = arith.constant 0 : i32
    return %arg0, %c0_i32, %c0_i32_0 : i32, i32, i32
  }
}

module attributes {stable_mosaic.version = 11 : i64} {
  func.func @_residual_kernel(%arg0: i32, %arg1: memref<1x8x32xbf16, #tpu.memory_space<vmem>>, %arg2: memref<1x4x32xbf16, #tpu.memory_space<vmem>>, %arg3: memref<8x4xbf16, #tpu.memory_space<vmem>>, %arg4: memref<8x1xf32, #tpu.memory_space<vmem>>, %arg5: memref<8x1xf32, #tpu.memory_space<vmem>>, %arg6: memref<8x1xf32, #tpu.memory_space<vmem>>, %arg7: memref<8x1xf32, #tpu.memory_space<vmem>>, %arg8: memref<1x8x32xf32, #tpu.memory_space<vmem>>) attributes {dimension_semantics = [#tpu.dimension_semantics<parallel>], iteration_bounds = array<i64: 1>, scalar_prefetch = 0 : i64, scratch_operands = 0 : i64, tpu.core_type = #tpu.core_type<tc>, window_params = [{transform_indices = @transform_0, window_bounds = array<i64: 1, 8, 32>}, {transform_indices = @transform_1, window_bounds = array<i64: 1, 4, 32>}, {pipeline_mode = #tpu.pipeline_mode<synchronous>, transform_indices = @transform_2, window_bounds = array<i64: 8, 4>}, {pipeline_mode = #tpu.pipeline_mode<synchronous>, transform_indices = @transform_3, window_bounds = array<i64: 8, 1>}, {pipeline_mode = #tpu.pipeline_mode<synchronous>, transform_indices = @transform_4, window_bounds = array<i64: 8, 1>}, {pipeline_mode = #tpu.pipeline_mode<synchronous>, transform_indices = @transform_5, window_bounds = array<i64: 8, 1>}, {pipeline_mode = #tpu.pipeline_mode<synchronous>, transform_indices = @transform_6, window_bounds = array<i64: 8, 1>}, {transform_indices = @transform_7, window_bounds = array<i64: 1, 8, 32>}]} {
    %c0 = arith.constant 0 : index
    %c0_0 = arith.constant 0 : index
    %0 = vector.load %arg3[%c0, %c0_0] : memref<8x4xbf16, #tpu.memory_space<vmem>>, vector<8x4xbf16>
    %c0_1 = arith.constant 0 : index
    %c0_2 = arith.constant 0 : index
    %c0_3 = arith.constant 0 : index
    %1 = vector.load %arg2[%c0_1, %c0_2, %c0_3] : memref<1x4x32xbf16, #tpu.memory_space<vmem>>, vector<1x4x32xbf16>
    %2 = vector.shape_cast %1 : vector<1x4x32xbf16> to vector<4x32xbf16>
    %cst = arith.constant dense<0.000000e+00> : vector<8x32xf32>
    %3 = tpu.matmul %0, %2, %cst {dimension_numbers = #tpu.dot_dimension_numbers<[1], [0], [0], [1], [0, 0, 1, 1], [], []>} : vector<8x4xbf16>, vector<4x32xbf16>, vector<8x32xf32> -> vector<8x32xf32>
    %c0_4 = arith.constant 0 : index
    %c0_5 = arith.constant 0 : index
    %c0_6 = arith.constant 0 : index
    %4 = vector.load %arg1[%c0_4, %c0_5, %c0_6] : memref<1x8x32xbf16, #tpu.memory_space<vmem>>, vector<1x8x32xbf16>
    %5 = vector.shape_cast %4 : vector<1x8x32xbf16> to vector<8x32xbf16>
    %6 = arith.extf %5 : vector<8x32xbf16> to vector<8x32xf32>
    %c0_7 = arith.constant 0 : index
    %c0_8 = arith.constant 0 : index
    %7 = vector.load %arg4[%c0_7, %c0_8] : memref<8x1xf32, #tpu.memory_space<vmem>>, vector<8x1xf32>
    %8 = vector.broadcast %7 : vector<8x1xf32> to vector<8x32xf32>
    %9 = arith.mulf %6, %8 : vector<8x32xf32>
    %c0_9 = arith.constant 0 : index
    %c0_10 = arith.constant 0 : index
    %10 = vector.load %arg5[%c0_9, %c0_10] : memref<8x1xf32, #tpu.memory_space<vmem>>, vector<8x1xf32>
    %11 = vector.broadcast %10 : vector<8x1xf32> to vector<8x32xf32>
    %12 = arith.addf %9, %11 : vector<8x32xf32>
    %c0_11 = arith.constant 0 : index
    %c0_12 = arith.constant 0 : index
    %13 = vector.load %arg6[%c0_11, %c0_12] : memref<8x1xf32, #tpu.memory_space<vmem>>, vector<8x1xf32>
    %14 = vector.broadcast %13 : vector<8x1xf32> to vector<8x32xf32>
    %15 = arith.mulf %3, %14 : vector<8x32xf32>
    %c0_13 = arith.constant 0 : index
    %c0_14 = arith.constant 0 : index
    %16 = vector.load %arg7[%c0_13, %c0_14] : memref<8x1xf32, #tpu.memory_space<vmem>>, vector<8x1xf32>
    %17 = vector.broadcast %16 : vector<8x1xf32> to vector<8x32xf32>
    %18 = arith.addf %15, %17 : vector<8x32xf32>
    %19 = arith.addf %12, %18 : vector<8x32xf32>
    %cst_15 = arith.constant 0.000000e+00 : f32
    %20 = vector.broadcast %cst_15 : f32 to vector<8x32xf32>
    %21 = arith.maximumf %19, %20 : vector<8x32xf32>
    %c0_16 = arith.constant 0 : index
    %c0_17 = arith.constant 0 : index
    %c0_18 = arith.constant 0 : index
    %22 = vector.load %arg8[%c0_16, %c0_17, %c0_18] : memref<1x8x32xf32, #tpu.memory_space<vmem>>, vector<1x8x32xf32>
    %23 = vector.shape_cast %22 : vector<1x8x32xf32> to vector<8x32xf32>
    %24 = vector.shape_cast %21 : vector<8x32xf32> to vector<1x8x32xf32>
    tpu.vector_store %arg8[%c0_16, %c0_17, %c0_18], %24 {strides = array<i32>} : memref<1x8x32xf32, #tpu.memory_space<vmem>>, vector<1x8x32xf32>,
    return
  }
  func.func @transform_0(%arg0: i32) -> (i32, i32, i32) {
    %c0_i32 = arith.constant 0 : i32
    %c0_i32_0 = arith.constant 0 : i32
    %c0_i32_1 = arith.constant 0 : i32
    return %arg0, %c0_i32, %c0_i32_0 : i32, i32, i32
  }
  func.func @transform_1(%arg0: i32) -> (i32, i32, i32) {
    %c0_i32 = arith.constant 0 : i32
    %c0_i32_0 = arith.constant 0 : i32
    %c0_i32_1 = arith.constant 0 : i32
    return %arg0, %c0_i32, %c0_i32_0 : i32, i32, i32
  }
  func.func @transform_2(%arg0: i32) -> (i32, i32) {
    %c0_i32 = arith.constant 0 : i32
    %c0_i32_0 = arith.constant 0 : i32
    %c0_i32_1 = arith.constant 0 : i32
    return %c0_i32, %c0_i32_0 : i32, i32
  }
  func.func @transform_3(%arg0: i32) -> (i32, i32) {
    %c0_i32 = arith.constant 0 : i32
    %c0_i32_0 = arith.constant 0 : i32
    %c0_i32_1 = arith.constant 0 : i32
    return %c0_i32, %c0_i32_0 : i32, i32
  }
  func.func @transform_4(%arg0: i32) -> (i32, i32) {
    %c0_i32 = arith.constant 0 : i32
    %c0_i32_0 = arith.constant 0 : i32
    %c0_i32_1 = arith.constant 0 : i32
    return %c0_i32, %c0_i32_0 : i32, i32
  }
  func.func @transform_5(%arg0: i32) -> (i32, i32) {
    %c0_i32 = arith.constant 0 : i32
    %c0_i32_0 = arith.constant 0 : i32
    %c0_i32_1 = arith.constant 0 : i32
    return %c0_i32, %c0_i32_0 : i32, i32
  }
  func.func @transform_6(%arg0: i32) -> (i32, i32) {
    %c0_i32 = arith.constant 0 : i32
    %c0_i32_0 = arith.constant 0 : i32
    %c0_i32_1 = arith.constant 0 : i32
    return %c0_i32, %c0_i32_0 : i32, i32
  }
  func.func @transform_7(%arg0: i32) -> (i32, i32, i32) {
    %c0_i32 = arith.constant 0 : i32
    %c0_i32_0 = arith.constant 0 : i32
    %c0_i32_1 = arith.constant 0 : i32
    return %arg0, %c0_i32, %c0_i32_0 : i32, i32, i32
  }
}

</mosaic_0001>

<bundles_post_ra>
// kernel: conv_block_forward.7
= control target key start
LH: loop header
LB: loop body
LE: loop exit
PB: predicated region body
PF: predicated region fallthrough
CT: control target
= control target key end

     0   :  { %vm33_vm0 = vcmask 1041408   ;;  %v129_v0 = vmov 0.0   ;;  %vm130_vm1 = vmmov 0   ;;  %v131_v4 = vmov 0   ;;  %s196_s1 = inlined_call_operand.vmem [shape: bf16[1,4,32], index: 1, kind: input, shape index: {}]   ;;  %s197_s2 = inlined_call_operand.vmem [shape: bf16[8,4], index: 2, kind: input, shape index: {}]   ;;  %s198_s3 = inlined_call_operand.vmem [shape: f32[8,1], index: 3, kind: input, shape index: {}]   ;;  %s199_s4 = inlined_call_operand.vmem [shape: f32[8,1], index: 4, kind: input, shape index: {}]   ;;  %s200_s5 = inlined_call_operand.vmem [shape: f32[8,1], index: 5, kind: input, shape index: {}]   ;;  %s201_s6 = inlined_call_operand.vmem [shape: f32[8,1], index: 6, kind: input, shape index: {}]   ;;  %s202_s0 = inlined_call_operand.vmem [shape: bf16[1,8,32], index: 0, kind: input, shape index: {}]   ;;  %s203_s7 = inlined_call_operand.vmem [shape: f32[1,8,32], index: 7, kind: output, shape index: {}]  }
   0x1   :  { %118 = vmatprep.subr.bf16.mxu0 %v129_v0  ;;  %v28_v1 = vld [vmem:[%s196_s1] sm:$0x3]  ;;  %120 = vmatprep.mubr.msk.bf16.mxu0 %vm130_vm1, %v129_v0  ;;  %vm29_vm2 = vcmask 31744   ;;  %vm109_vm3 = vcmask 261120  }
   0x2   :  { %v79_v2 = vld [vmem:[%s198_s3] sm:$0xff]  ;;  %v35_v3 = vsel %vm33_vm0, %v28_v1, 0  ;;  %127 = vset.pattern.permute.xlu0 %v131_v4  ;;  %128 = vset.pattern.permute.xlu1 %v131_v4 }
   0x3   :  { %v86_v5 = vld [vmem:[%s199_s4] sm:$0xff]  ;;  %119 = vmatpush3.bf16.msra.mxu0 %v35_v3  ;;  %82 = vperm.xlu0 %127, %v79_v2  }
   0x4   :  { %v27_v6 = vld [vmem:[%s197_s2] sm:$0xf]  ;;  %89 = vperm.xlu1 %128, %v86_v5  }
   0x5   :  { %v93_v7 = vld [vmem:[%s200_s5] sm:$0xff] }
   0x6   :  { %v100_v8 = vld [vmem:[%s201_s6] sm:$0xff]  ;;  %121 = vmatmul.mubr.msk.bf16.vlgmr.msra.gmra.mrb[0].mxu0 %vm29_vm2, %v27_v6 }
   0x7   :  { %96 = vperm.xlu0 %127, %v93_v7   ;;  %v77_v9 = vld [vmem:[%s202_s0] sm:$0xf] }
   0x8   :  { %103 = vperm.xlu1 %128, %v100_v8   ;;  %v78_v11 = vunpack.c.l.bf16 %v77_v9 }
  0x82   :  { %v83_v10 = vpop.permute.xlu0 %82 }
  0x83   :  { %v90_v12 = vpop.permute.xlu1 %89  ;;  %v85_v13 = vmul.f32 %v83_v10, %v78_v11 }
  0x85   :  { %v92_v20 = vadd.f32 %v90_v12, %v85_v13 }
  0x86   :  { %v97_v14 = vpop.permute.xlu0 %96 }
  0x87   :  { %v104_v18 = vpop.permute.xlu1 %103 }
  0xd9   :  { %v71_v15 = vpop.f32.mrb[0].mxu0 }
  0xda   :  { %v99_v16 = vmul.f32 %v97_v14, %v71_v15  ;;  %v122_v17 = vpop.f32.mrb[1].mxu0 }
  0xdb   :  { %v74_v19 = vpop.f32.mrb[2].mxu0 }
  0xdc   :  { %v106_v21 = vadd.f32 %v104_v18, %v99_v16  ;;  %v123_v22 = vpop.f32.mrb[3].mxu0 }
  0xde   :  { %v107_v23 = vadd.f32 %v106_v21, %v92_v20 }
  0xe0   :  { %v108_v24 = vmax.f32 %v107_v23, 0.0 }
  0xe2   :  { %110 = vst.msk [vmem:[%s203_s7] sm:$0xff] %vm109_vm3, %v108_v24 }

// kernel: conv_block_forward.5
= control target key start
LH: loop header
LB: loop body
LE: loop exit
PB: predicated region body
PF: predicated region fallthrough
CT: control target
= control target key end

     0   :  { %v280_v0 = vmov 0   ;;  %v281_v3 = vmov 0.0   ;;  %vm67_vm0 = vcmask 1043456   ;;  %vm42_vm1 = vcmask 1047808   ;;  %s284_s24 = smov 127   ;;  %s285_s25 = smov 97   ;;  %s349_s1 = inlined_call_operand.vmem [shape: f32[8,1], index: 1, kind: input, shape index: {}]   ;;  %s350_s2 = inlined_call_operand.vmem [shape: f32[8,1], index: 2, kind: input, shape index: {}]   ;;  %s351_s0 = inlined_call_operand.vmem [shape: bf16[1,8,32], index: 0, kind: input, shape index: {}]   ;;  %s352_s3 = inlined_call_operand.vmem [shape: bf16[3,8,8], index: 3, kind: input, shape index: {}]   ;;  %s353_s4 = inlined_call_operand.vmem [shape: bf16[1,8,32], index: 4, kind: output, shape index: {0}]   ;;  %s354_s5 = inlined_call_operand.vmem [shape: f32[1,8,2], index: 5, kind: output, shape index: {1}]  }
   0x1   :  { %279 = vset.pattern.permute.xlu0 %v280_v0  ;;  %v22_v1 = vld [vmem:[%s349_s1] sm:$0xff]  ;;  %250 = vmatprep.subr.bf16.mxu1 %v281_v3  ;;  %s282_s1 = smov 32   ;;  %vm283_vm2 = vmmov 0   ;;  %vm63_vm3 = vcmask 64512   ;;  %v37_v18 = vlaneseq  ;;  %v242_v33 = vld [vmem:[%s352_s3 + $0x8] sm:$0xf] }
   0x2   :  { %25 = vperm.xlu0 %279, %v22_v1   ;;  %v29_v2 = vld [vmem:[%s350_s2] sm:$0xff]  ;;  %256 = vmatprep.subr.bf16.mxu0 %v281_v3  ;;  %vm218_vm9 = vcmask 261120   ;;  %vm216_vm10 = vcmask 257024   ;;  %vm226_vm11 = vcmask 7168   ;;  %vm228_vm12 = vcmask 15360  }
   0x3   :  { %v20_v4 = vld [vmem:[%s351_s0] sm:$0xf]  ;;  %258 = vmatprep.mubr.msk.bf16.mxu0 %vm283_vm2, %v281_v3  ;;  %252 = vmatprep.mubr.msk.bf16.mxu1 %vm283_vm2, %v281_v3  ;;  %v239_v15 = vld [vmem:[%s352_s3 + $0x4] sm:$0xf]  ;;  %v38_v19 = vand.u32 127, %v37_v18 }
   0x4   :  { %v21_v5 = vunpack.c.l.bf16 %v20_v4  ;;  %v58_v31 = vld [vmem:[%s352_s3] sm:$0xf] }
   0x5   :  { %v238_v20 = vadd.s32 4294967280, %v38_v19  ;;  %vm39_vm4 = vcmp.ge.s32.totalorder %v38_v19, 16 }
   0x6   :  { %32 = vperm.xlu0 %279, %v29_v2  }
   0x7   :  { %v41_v21 = vsel %vm39_vm4, %v238_v20, %v38_v19 }
   0x8   :  { %v49_v22 = vadd.s32 4294967295, %v41_v21  ;;  %v157_v23 = vadd.s32 1, %v41_v21 }
   0xa   :  { %vm50_vm5 = vcmp.ge.s32.totalorder %v49_v22, 0  ;;  %vm51_vm6 = vcmp.lt.s32.totalorder %v49_v22, 16  ;;  %vm159_vm7 = vcmp.lt.s32.totalorder %v157_v23, 16 }
   0xb   :  { %vm52_vm8 = vmand %vm50_vm5, %vm51_vm6 }
  0x81   :  { %v26_v6 = vpop.permute.xlu0 %25 }
  0x82   :  { %v28_v7 = vmul.f32 %v26_v6, %v21_v5 }
  0x85   :  { %v33_v8 = vpop.permute.xlu0 %32 }
  0x86   :  { %v35_v9 = vadd.f32 %v33_v8, %v28_v7 }
  0x88   :  { %v36_v10 = vmax.f32 %v35_v9, 0.0 }
  0x8a   :  { %43 = vrot.lane.b32.xlu1 %v36_v10, %s282_s1  ;;  %v62_v11 = vpack.c.bf16 %v36_v10, %v36_v10 }
  0x8c   :  { %v69_v12 = vsel %vm67_vm0, %v62_v11, 0 }
  0x8d   :  { %251 = vmatpush3.bf16.msra.mxu1 %v69_v12 }
  0x90   :  { %253 = vmatmul.mubr.msk.bf16.vlgmr.msra.gmra.mrb[0].mxu1 %vm63_vm3, %v239_v15 }
  0xfc   :  { %v44_v13 = vpop.permute.xlu1 %43 }
  0xfd   :  { %v45_v14 = vsel %vm42_vm1, %v44_v13, %v36_v10 }
  0xfe   :  { %46 = vrot.lane.b32.xlu1 %v45_v14, %s282_s1 }
 0x163   :  { %v105_v34 = vpop.f32.mrb[0].mxu1 }
 0x164   :  { %v254_v35 = vpop.f32.mrb[1].mxu1 }
 0x165   :  { %v108_v36 = vpop.f32.mrb[2].mxu1 }
 0x166   :  { %v255_v37 = vpop.f32.mrb[3].mxu1 }
 0x170   :  { %v47_v16 = vpop.permute.xlu1 %46 }
 0x171   :  { %v48_v17 = vsel %vm42_vm1, %v47_v16, %v36_v10 }
 0x172   :  { %161 = vrot.lane.b32.xlu1 %v48_v17, %s284_s24  ;;  %54 = vrot.lane.b32.xlu0 %v48_v17, %s285_s25 }
 0x1e4   :  { %v162_v24 = vpop.permute.xlu1 %161  ;;  %v55_v25 = vpop.permute.xlu0 %54 }
 0x1e5   :  { %v164_v26 = vsel %vm159_vm7, %v162_v24, 0.0  ;;  %v57_v27 = vsel %vm52_vm8, %v55_v25, 0.0 }
 0x1e6   :  { %v59_v28 = vpack.c.bf16 %v57_v27, %v57_v27  ;;  %v167_v29 = vpack.c.bf16 %v164_v26, %v164_v26 }
 0x1e8   :  { %v115_v30 = vsel %vm67_vm0, %v59_v28, 0  ;;  %v172_v32 = vsel %vm67_vm0, %v167_v29, 0 }
 0x1e9   :  { %257 = vmatpush3.bf16.msra.mxu0 %v115_v30 }
 0x1ea   :  { %262 = vmatprep.subr.bf16.mxu0 %v281_v3 }
 0x1ec   :  { %259 = vmatmul.mubr.msk.bf16.vlgmr.msra.gmra.mrb[0].mxu0 %vm63_vm3, %v58_v31 }
 0x1ed   :  { %263 = vmatpush3.bf16.msra.mxu0 %v172_v32  ;;  %264 = vmatprep.mubr.msk.bf16.mxu0 %vm283_vm2, %v281_v3 }
 0x1f8   :  { %265 = vmatmul.mubr.msk.bf16.vlgmr.msra.gmra.mrb[0].mxu0 %vm63_vm3, %v242_v33 }
 0x2cb   :  { %v208_v38 = vpop.f32.mrb[0].mxu0 }
 0x2cc   :  { %v268_v39 = vadd.f32 %v208_v38, %v105_v34  ;;  %v266_v40 = vpop.f32.mrb[1].mxu0 }
 0x2cd   :  { %v211_v41 = vpop.f32.mrb[2].mxu0 }
 0x2ce   :  { %v215_v42 = vpack.c.bf16 %v268_v39, %v268_v39  ;;  %v267_v43 = vpop.f32.mrb[3].mxu0  ;;  %v219_v44 = vsel %vm218_vm9, %v268_v39, 0.0  ;;  %v222_v45 = vmul.f32 %v268_v39, %v268_v39 }
 0x2cf   :  { %220 = vadd.xlane.f32.xlu0 %v219_v44 }
 0x2d0   :  { %217 = vst.msk [vmem:[%s353_s4] sm:$0xf] %vm216_vm10, %v215_v42  ;;  %v223_v46 = vsel %vm218_vm9, %v222_v45, 0.0 }
 0x2d1   :  { %224 = vadd.xlane.f32.xlu1 %v223_v46 }
 0x35c   :  { %v221_v47 = vpop.xlane.xlu0 %220 }
 0x35e   :  { %v225_v48 = vpop.xlane.xlu1 %224 }
 0x35f   :  { %v227_v49 = vsel %vm226_vm11, %v221_v47, %v225_v48 }
 0x360   :  { %229 = vst.msk [vmem:[%s354_s5] sm:$0xff] %vm228_vm12, %v227_v49 }

// kernel: conv_block_forward.4
= control target key start
LH: loop header
LB: loop body
LE: loop exit
PB: predicated region body
PF: predicated region fallthrough
CT: control target
= control target key end

     0   :  { %s326_s20 = smov 32   ;;  %vm25_vm0 = vcmask 1047808   ;;  %v327_v4 = vmov 0.0   ;;  %vm328_vm1 = vmmov 0   ;;  %vm49_vm2 = vcmask 1041408   ;;  %s329_s22 = smov 97   ;;  %s402_s0 = inlined_call_operand.vmem [shape: bf16[1,4,32], index: 0, kind: input, shape index: {}]   ;;  %s403_s1 = inlined_call_operand.vmem [shape: bf16[3,8,4], index: 1, kind: input, shape index: {}]   ;;  %s404_s2 = inlined_call_operand.vmem [shape: bf16[8,4], index: 2, kind: input, shape index: {}]   ;;  %s405_s3 = inlined_call_operand.vmem [shape: bf16[1,8,32], index: 3, kind: output, shape index: {0}]   ;;  %s406_s4 = inlined_call_operand.vmem [shape: f32[1,8,2], index: 4, kind: output, shape index: {1}]   ;;  %s407_s5 = inlined_call_operand.vmem [shape: f32[1,8,2], index: 5, kind: output, shape index: {2}]  }
   0x1   :  { %v18_v0 = vld [vmem:[%s402_s0] sm:$0x3]  ;;  %298 = vmatprep.subr.bf16.mxu0 %v327_v4  ;;  %292 = vmatprep.subr.bf16.mxu1 %v327_v4  ;;  %v278_v6 = vld [vmem:[%s403_s1 + $0x4] sm:$0xf]  ;;  %vm45_vm3 = vcmask 31744   ;;  %s330_s23 = smov 127   ;;  %v20_v10 = vlaneseq }
   0x2   :  { %v19_v1 = vunpack.c.l.bf16 %v18_v0  ;;  %300 = vmatprep.mubr.msk.bf16.mxu0 %vm328_vm1, %v327_v4  ;;  %294 = vmatprep.mubr.msk.bf16.mxu1 %vm328_vm1, %v327_v4  ;;  %v51_v5 = vsel %vm49_vm2, %v18_v0, 0  ;;  %v197_v9 = vld [vmem:[%s404_s2] sm:$0xf]  ;;  %v281_v25 = vld [vmem:[%s403_s1 + $0x8] sm:$0xf]  ;;  %vm244_vm9 = vcmask 261120  }
   0x3   :  { %293 = vmatpush3.bf16.msra.mxu1 %v51_v5  ;;  %v21_v11 = vand.u32 127, %v20_v10  ;;  %v41_v22 = vld [vmem:[%s403_s1] sm:$0xf]  ;;  %vm242_vm10 = vcmask 257024   ;;  %vm252_vm11 = vcmask 7168   ;;  %vm254_vm12 = vcmask 15360  }
   0x4   :  { %26 = vrot.lane.b32.xlu0 %v19_v1, %s326_s20  ;;  %310 = vmatprep.subr.bf16.mxu1 %v327_v4 }
   0x5   :  { %v277_v12 = vadd.s32 4294967280, %v21_v11  ;;  %vm22_vm4 = vcmp.ge.s32.totalorder %v21_v11, 16 }
   0x6   :  { %295 = vmatmul.mubr.msk.bf16.vlgmr.msra.gmra.mrb[0].mxu1 %vm45_vm3, %v278_v6 }
   0x7   :  { %311 = vmatpush3.bf16.msra.mxu1 %v51_v5  ;;  %312 = vmatprep.mubr.msk.bf16.mxu1 %vm328_vm1, %v327_v4  ;;  %v24_v13 = vsel %vm22_vm4, %v277_v12, %v21_v11 }
   0x8   :  { %v32_v14 = vadd.s32 4294967295, %v24_v13  ;;  %v139_v15 = vadd.s32 1, %v24_v13 }
   0xa   :  { %vm33_vm5 = vcmp.ge.s32.totalorder %v32_v14, 0  ;;  %vm34_vm6 = vcmp.lt.s32.totalorder %v32_v14, 16  ;;  %vm141_vm8 = vcmp.lt.s32.totalorder %v139_v15, 16 }
   0xb   :  { %vm35_vm7 = vmand %vm33_vm5, %vm34_vm6 }
   0xe   :  { %313 = vmatmul.mubr.msk.bf16.vlgmr.msra.gmra.mrb[4].mxu1 %vm45_vm3, %v197_v9 }
  0x76   :  { %v27_v2 = vpop.permute.xlu0 %26 }
  0x77   :  { %v28_v3 = vsel %vm25_vm0, %v27_v2, %v19_v1 }
  0x78   :  { %29 = vrot.lane.b32.xlu0 %v28_v3, %s326_s20 }
  0xd9   :  { %v87_v26 = vpop.f32.mrb[0].mxu1 }
  0xda   :  { %v296_v27 = vpop.f32.mrb[1].mxu1 }
  0xdb   :  { %v90_v28 = vpop.f32.mrb[2].mxu1 }
  0xdc   :  { %v297_v29 = vpop.f32.mrb[3].mxu1 }
  0xe1   :  { %v235_v30 = vpop.f32.mrb[4].mxu1 }
  0xe2   :  { %v314_v31 = vpop.f32.mrb[5].mxu1  ;;  %v256_v43 = vsel %vm244_vm9, %v235_v30, 0.0  ;;  %v259_v44 = vmul.f32 %v235_v30, %v235_v30 }
  0xe3   :  { %v238_v32 = vpop.f32.mrb[6].mxu1 }
  0xe4   :  { %v315_v33 = vpop.f32.mrb[7].mxu1  ;;  %v260_v45 = vsel %vm244_vm9, %v259_v44, 0.0 }
  0xea   :  { %v30_v7 = vpop.permute.xlu0 %29 }
  0xeb   :  { %v31_v8 = vsel %vm25_vm0, %v30_v7, %v19_v1 }
  0xec   :  { %37 = vrot.lane.b32.xlu1 %v31_v8, %s329_s22 }
  0xf0   :  { %143 = vrot.lane.b32.xlu1 %v31_v8, %s330_s23 }
 0x15e   :  { %v38_v16 = vpop.permute.xlu1 %37 }
 0x15f   :  { %v40_v17 = vsel %vm35_vm7, %v38_v16, 0.0 }
 0x160   :  { %v42_v18 = vpack.c.bf16 %v40_v17, %v40_v17 }
 0x162   :  { %v144_v19 = vpop.permute.xlu1 %143  ;;  %v97_v20 = vsel %vm49_vm2, %v42_v18, 0 }
 0x163   :  { %v146_v21 = vsel %vm141_vm8, %v144_v19, 0.0  ;;  %299 = vmatpush3.bf16.msra.mxu0 %v97_v20 }
 0x164   :  { %v149_v23 = vpack.c.bf16 %v146_v21, %v146_v21  ;;  %304 = vmatprep.subr.bf16.mxu0 %v327_v4 }
 0x166   :  { %v154_v24 = vsel %vm49_vm2, %v149_v23, 0  ;;  %301 = vmatmul.mubr.msk.bf16.vlgmr.msra.gmra.mrb[0].mxu0 %vm45_vm3, %v41_v22 }
 0x167   :  { %305 = vmatpush3.bf16.msra.mxu0 %v154_v24  ;;  %306 = vmatprep.mubr.msk.bf16.mxu0 %vm328_vm1, %v327_v4 }
 0x172   :  { %307 = vmatmul.mubr.msk.bf16.vlgmr.msra.gmra.mrb[0].mxu0 %vm45_vm3, %v281_v25 }
 0x245   :  { %v190_v34 = vpop.f32.mrb[0].mxu0 }
 0x246   :  { %v316_v35 = vadd.f32 %v190_v34, %v87_v26  ;;  %v308_v36 = vpop.f32.mrb[1].mxu0 }
 0x247   :  { %v193_v37 = vpop.f32.mrb[2].mxu0 }
 0x248   :  { %v241_v38 = vpack.c.bf16 %v316_v35, %v316_v35  ;;  %v309_v39 = vpop.f32.mrb[3].mxu0  ;;  %v245_v40 = vsel %vm244_vm9, %v316_v35, 0.0  ;;  %v248_v41 = vmul.f32 %v316_v35, %v316_v35 }
 0x249   :  { %246 = vadd.xlane.f32.xlu0 %v245_v40 }
 0x24a   :  { %243 = vst.msk [vmem:[%s405_s3] sm:$0xf] %vm242_vm10, %v241_v38  ;;  %v249_v42 = vsel %vm244_vm9, %v248_v41, 0.0 }
 0x24b   :  { %250 = vadd.xlane.f32.xlu1 %v249_v42 }
 0x24d   :  { %257 = vadd.xlane.f32.xlu0 %v256_v43 }
 0x251   :  { %261 = vadd.xlane.f32.xlu0 %v260_v45 }
 0x2d6   :  { %v247_v46 = vpop.xlane.xlu0 %246 }
 0x2d8   :  { %v251_v47 = vpop.xlane.xlu1 %250 }
 0x2d9   :  { %v253_v48 = vsel %vm252_vm11, %v247_v46, %v251_v47 }
 0x2da   :  { %255 = vst.msk [vmem:[%s406_s4] sm:$0xff] %vm254_vm12, %v253_v48  ;;  %v258_v49 = vpop.xlane.xlu0 %257 }
 0x2de   :  { %v262_v50 = vpop.xlane.xlu0 %261 }
 0x2df   :  { %v263_v51 = vsel %vm252_vm11, %v258_v49, %v262_v50 }
 0x2e0   :  { %264 = vst.msk [vmem:[%s407_s5] sm:$0xff] %vm254_vm12, %v263_v51 }

</bundles_post_ra>
